<compile_context>
chip_gen: v6e
topology: v6e:2x2x1
jax: 0.10.0
libtpu: 0.0.40
codegen_flags: <defaults>
</compile_context>

<pallas_src>
import functools

import jax
import jax.numpy as jnp
import numpy as np
from jax.experimental import pallas as pl
from jax.experimental.pallas import tpu as pltpu

# MXU-native operand dtype on v6e/v7x; accumulation is always f32 via
# preferred_element_type.  Set to jnp.float32 for bit-exact f32 compute.
COMPUTE_DTYPE = jnp.bfloat16
# HBM output dtype (the kernel itself re-consumes key/output/tactic as bf16
# anyway).  Set to jnp.float32 if a downstream consumer truly needs f32.
OUT_DTYPE = jnp.bfloat16


def _round_up(x, m):
    return -(-x // m) * m


# ----------------------------- Pallas kernel ------------------------------ #
def _fused_forward_kernel(n_kh, n_tfh, b_t, cdtype, wmap, bmap, *refs):
    """Whole FillingsBasedModel.forward on one (batch-tile, spatial-tile) block.

    Activations arrive as raw f32 blocks (b_t, C, T) with the spatial tile T
    on the lane axis and are cast to the compute dtype on the VPU (free slot).
    Weights live in a single bf16 slab, biases in a single f32 slab; both are
    unpacked via static ref slices (zero runtime cost).
    """
    it = iter(refs)
    inp_ref = next(it)
    kh_refs = [next(it) for _ in range(n_kh)]
    tfh_refs = [next(it) for _ in range(n_tfh)]
    w_ref = next(it)
    bias_ref = next(it)
    o_key, o_out, o_mode, o_tf, o_sf = (next(it) for _ in range(5))

    # Unpack every weight / bias block once (tiny, VMEM-resident).
    W = {name: w_ref[off:off + cout, :cin]
         for name, (off, cout, cin) in wmap.items()}
    B = {name: bias_ref[off:off + cout, :]
         for name, (off, cout) in bmap.items()}

    def gen(parts, bname):
        # Channel-concat + 1x1 conv == sum of per-source partial matmuls.
        acc = None
        for wv, xv in parts:
            p = jnp.dot(wv, xv, preferred_element_type=jnp.float32)
            acc = p if acc is None else acc + p
        return jnp.maximum(acc + B[bname], 0.0)        # f32 (Cout, T)

    for b in range(b_t):                               # small static batch fold
        x = inp_ref[b].astype(cdtype)                  # (C_in,  T)
        kh = [r[b].astype(cdtype) for r in kh_refs]    # each (C_key,  T)
        tfh = [r[b].astype(cdtype) for r in tfh_refs]  # each (C_fill, T)

        # key = key_gen(inp, cat(keys_history, dim=-3))
        key_f = gen([(W["kg_inp"], x)]
                    + [(W[f"kg_kh{i}"], kh[i]) for i in range(n_kh)], "kg")
        key_c = key_f.astype(cdtype)
        # output = handler(key, inp)
        out_f = gen([(W["hd_key"], key_c), (W["hd_inp"], x)], "hd")
        out_c = out_f.astype(cdtype)
        # mode = mode_gen(key, inp)
        mode_f = gen([(W["mg_key"], key_c), (W["mg_inp"], x)], "mg")
        # tactic_fillings = tactic_fillings_gen(key, inp, output)
        tf_f = gen([(W["tg_key"], key_c), (W["tg_inp"], x),
                    (W["tg_out"], out_c)], "tg")
        tf_c = tf_f.astype(cdtype)
        # strategy_fillings = strategy_fillings_gen(
        #     key, cat(keys_history), cat(tf_history + [tactic_fillings]))
        sf_f = gen([(W["sg_key"], key_c)]
                   + [(W[f"sg_kh{i}"], kh[i]) for i in range(n_kh)]
                   + [(W[f"sg_tfh{i}"], tfh[i]) for i in range(n_tfh)]
                   + [(W["sg_tf"], tf_c)], "sg")

        o_key[b] = key_f.astype(o_key.dtype)
        o_out[b] = out_f.astype(o_out.dtype)
        o_mode[b] = mode_f.astype(o_mode.dtype)
        o_tf[b] = tf_f.astype(o_tf.dtype)
        o_sf[b] = sf_f.astype(o_sf.dtype)


# ------------------------------ Parameters --------------------------------- #
def init_params(c_in, c_key, c_out, c_mode, c_fill, n_keys_hist, n_fill_hist,
                seed=1, weight_dtype=COMPUTE_DTYPE):
    """Deterministic params, pre-transposed (Cout, Cin), pre-split per source.

    Weights are stored in the MXU compute dtype once at init (no per-call
    re-conversion); biases stay f32 (added on the f32 accumulator).
    """
    root = jax.random.PRNGKey(seed)
    counter = [0]

    def nk():
        k = jax.random.fold_in(root, counter[0])
        counter[0] += 1
        return k

    def w(cout, cin):
        return (jax.random.normal(nk(), (cout, cin), jnp.float32) * 0.1
                ).astype(weight_dtype)

    def b(cout):
        return jax.random.normal(nk(), (cout, 1), jnp.float32) * 0.1

    return {
        # key = key_gen(inp, keys_history)
        "key_gen": {"w_inp": w(c_key, c_in),
                    "w_kh": [w(c_key, c_key) for _ in range(n_keys_hist)],
                    "b": b(c_key)},
        # output = handler(key, inp)
        "handler": {"w_key": w(c_out, c_key), "w_inp": w(c_out, c_in),
                    "b": b(c_out)},
        # mode = mode_gen(key, inp)
        "mode_gen": {"w_key": w(c_mode, c_key), "w_inp": w(c_mode, c_in),
                     "b": b(c_mode)},
        # tactic_fillings = tactic_fillings_gen(key, inp, output)
        "tactic_fillings_gen": {"w_key": w(c_fill, c_key),
                                "w_inp": w(c_fill, c_in),
                                "w_out": w(c_fill, c_out),
                                "b": b(c_fill)},
        # strategy_fillings = strategy_fillings_gen(key, keys_history, tf_history)
        "strategy_fillings_gen": {"w_key": w(c_fill, c_key),
                                  "w_kh": [w(c_fill, c_key)
                                           for _ in range(n_keys_hist)],
                                  "w_tfh": [w(c_fill, c_fill)
                                            for _ in range(n_fill_hist)],
                                  "w_tf": w(c_fill, c_fill),
                                  "b": b(c_fill)},
    }


def _pack_params(params, n_kh, n_tfh, compute_dtype):
    """Pack all weight blocks into one slab and all biases into one slab.

    Returns (w_slab bf16, wmap, b_slab f32, bmap) where the maps give the
    static (row_offset, cout[, cin]) of each block (row offsets 8-aligned).
    Only a few KB of data; negligible per-call cost.
    """
    kg, hd, mg, tg, sg = (params["key_gen"], params["handler"],
                          params["mode_gen"], params["tactic_fillings_gen"],
                          params["strategy_fillings_gen"])
    w_blocks = (
        [("kg_inp", kg["w_inp"])]
        + [(f"kg_kh{i}", kg["w_kh"][i]) for i in range(n_kh)]
        + [("hd_key", hd["w_key"]), ("hd_inp", hd["w_inp"])]
        + [("mg_key", mg["w_key"]), ("mg_inp", mg["w_inp"])]
        + [("tg_key", tg["w_key"]), ("tg_inp", tg["w_inp"]),
           ("tg_out", tg["w_out"])]
        + [("sg_key", sg["w_key"])]
        + [(f"sg_kh{i}", sg["w_kh"][i]) for i in range(n_kh)]
        + [(f"sg_tfh{i}", sg["w_tfh"][i]) for i in range(n_tfh)]
        + [("sg_tf", sg["w_tf"])]
    )
    b_blocks = [("kg", kg["b"]), ("hd", hd["b"]), ("mg", mg["b"]),
                ("tg", tg["b"]), ("sg", sg["b"])]

    cin_pad = max(a.shape[1] for _, a in w_blocks)

    wmap, rows, off = {}, [], 0
    for name, a in w_blocks:
        cout, cin = a.shape
        cout_pad = _round_up(cout, 8)
        wmap[name] = (off, cout, cin)
        rows.append(jnp.pad(a.astype(compute_dtype),
                            ((0, cout_pad - cout), (0, cin_pad - cin))))
        off += cout_pad
    w_slab = jnp.concatenate(rows, axis=0)

    bmap, brows, boff = {}, [], 0
    for name, a in b_blocks:
        cout = a.shape[0]
        cout_pad = _round_up(cout, 8)
        bmap[name] = (boff, cout)
        brows.append(jnp.pad(a.astype(jnp.float32),
                             ((0, cout_pad - cout), (0, 0))))
        boff += cout_pad
    b_slab = jnp.concatenate(brows, axis=0)
    return w_slab, wmap, b_slab, bmap


# -------------------------------- Forward ---------------------------------- #
def forward(params, inp, keys_history, tactic_fillings_history,
            compute_dtype=COMPUTE_DTYPE, out_dtype=OUT_DTYPE):
    """Mirrors FillingsBasedModel.forward with one fused pallas_call."""
    n, _, h, w_sp = inp.shape
    hw = h * w_sp
    n_kh = len(keys_history)
    n_tfh = len(tactic_fillings_history)

    c_key = params["key_gen"]["b"].shape[0]
    c_out = params["handler"]["b"].shape[0]
    c_mode = params["mode_gen"]["b"].shape[0]
    c_fill = params["tactic_fillings_gen"]["b"].shape[0]

    # (N, C, H, W) -> (N, C, H*W): pure reshape, NO wrapper-side dtype cast
    # (kernel casts on the VPU, so inputs are read from HBM exactly once).
    def to3d(t):
        return t.reshape(t.shape[0], t.shape[1], hw)

    acts = ([to3d(inp)]
            + [to3d(t) for t in keys_history]
            + [to3d(t) for t in tactic_fillings_history])

    w_slab, wmap, b_slab, bmap = _pack_params(params, n_kh, n_tfh, compute_dtype)

    # ---- tiling: largest 128-multiple spatial tile; optional batch fold ----
    t_hw = hw
    for cand in (8192, 4096, 2048, 1024, 512, 256, 128):
        if hw % cand == 0:
            t_hw = cand
            break

    in_bytes_row = sum(a.shape[1] for a in acts) * t_hw * inp.dtype.itemsize
    out_bytes_row = ((c_key + c_out + c_mode + 2 * c_fill) * t_hw
                     * np.dtype(out_dtype).itemsize)
    per_row_bytes = 2 * (in_bytes_row + out_bytes_row)      # double-buffered
    vmem_budget = 16 * 1024 * 1024

    b_t = 1
    if hw // t_hw == 1 and n > 1:
        # whole spatial extent per step -> fold batch rows to amortize
        # per-grid-step overhead, but keep >= 2 grid steps for v7x megacore.
        for cand_b in range(min(n, 8), 0, -1):
            if (n % cand_b == 0
                    and cand_b * per_row_bytes <= vmem_budget
                    and (n // cand_b) * (hw // t_hw) >= 2):
                b_t = cand_b
                break

    # v7x megacore: guarantee at least 2 grid steps so both TCs get work.
    if (n // b_t) * (hw // t_hw) < 2 and t_hw % 256 == 0:
        t_hw //= 2

    grid = (n // b_t, hw // t_hw)

    def act_spec(arr):
        return pl.BlockSpec((b_t, arr.shape[1], t_hw), lambda i, j: (i, 0, j))

    def const_spec(arr):
        return pl.BlockSpec(arr.shape, lambda i, j: (0,) * arr.ndim)

    in_specs = ([act_spec(a) for a in acts]
                + [const_spec(w_slab), const_spec(b_slab)])

    out_channels = (c_key, c_out, c_mode, c_fill, c_fill)
    out_shape = tuple(jax.ShapeDtypeStruct((n, c, hw), out_dtype)
                      for c in out_channels)
    out_specs = tuple(pl.BlockSpec((b_t, c, t_hw), lambda i, j: (i, 0, j))
                      for c in out_channels)

    kernel = functools.partial(_fused_forward_kernel, n_kh, n_tfh, b_t,
                               compute_dtype, wmap, bmap)

    outs = pl.pallas_call(
        kernel,
        out_shape=out_shape,
        grid_spec=pltpu.PrefetchScalarGridSpec(
            num_scalar_prefetch=0,
            grid=grid,
            in_specs=in_specs,
            out_specs=out_specs,
        ),
        compiler_params=pltpu.CompilerParams(
            dimension_semantics=("parallel", "parallel"),
        ),
    )(*acts, w_slab, b_slab)

    # (N, C, H*W) -> (N, C, H, W): pure reshape.
    return tuple(o.reshape(n, c, h, w_sp) for o, c in zip(outs, out_channels))


# -------------------- Pure-JAX reference (validation only) ----------------- #
def forward_reference(params, inp, keys_history, tactic_fillings_history,
                      compute_dtype=COMPUTE_DTYPE):
    """Concat-then-matmul semantics (matches the torch.cat formulation)."""
    def gen(w_parts, b, x_parts):
        wc = jnp.concatenate([w.astype(compute_dtype) for w in w_parts], axis=1)
        xc = jnp.concatenate([x.astype(compute_dtype) for x in x_parts], axis=-3)
        n_, c_, h_, w_ = xc.shape
        xf = xc.reshape(n_, c_, h_ * w_)
        y = jnp.einsum("oc,nch->noh", wc, xf,
                       preferred_element_type=jnp.float32)
        y = jnp.maximum(y + b[None, :, :].astype(jnp.float32), 0.0)
        return y.reshape(n_, -1, h_, w_)

    kg, hd, mg, tg, sg = (params["key_gen"], params["handler"],
                          params["mode_gen"], params["tactic_fillings_gen"],
                          params["strategy_fillings_gen"])
    key = gen([kg["w_inp"]] + list(kg["w_kh"]), kg["b"],
              [inp] + list(keys_history))
    output = gen([hd["w_key"], hd["w_inp"]], hd["b"], [key, inp])
    mode = gen([mg["w_key"], mg["w_inp"]], mg["b"], [key, inp])
    tactic = gen([tg["w_key"], tg["w_inp"], tg["w_out"]], tg["b"],
                 [key, inp, output])
    strategy = gen([sg["w_key"]] + list(sg["w_kh"]) + list(sg["w_tfh"])
                   + [sg["w_tf"]], sg["b"],
                   [key] + list(keys_history)
                   + list(tactic_fillings_history) + [tactic])
    return key, output, mode, tactic, strategy


# TODO(synk): train_step / fillings_train_step (Adam optimizers, MSE criterion,
# HistoryStorage) are training-time machinery, not part of the forward pass;
# no Pallas equivalent is emitted.  For a rolling history at inference time,
# key/tactic_fillings could be written in place into a preallocated history
# slab via input_output_aliases instead of list-append; likewise the 5 outputs
# could be fused into one channel slab if the consumer reads channel ranges.


if __name__ == "__main__":
    N, C_IN, H, W = 2, 4, 16, 16
    C_KEY, C_OUT, C_MODE, C_FILL = 8, 4, 4, 4
    N_KEYS_HIST, N_FILL_HIST = 2, 2

    root = jax.random.PRNGKey(0)
    k_inp, k_kh, k_th = jax.random.split(root, 3)

    inp = jax.random.normal(k_inp, (N, C_IN, H, W), jnp.float32)
    kh_keys = jax.random.split(k_kh, N_KEYS_HIST)
    keys_history = [
        jax.random.normal(kh_keys[i], (N, C_KEY, H, W), jnp.float32)
        for i in range(N_KEYS_HIST)
    ]
    th_keys = jax.random.split(k_th, N_FILL_HIST)
    tactic_fillings_history = [
        jax.random.normal(th_keys[i], (N, C_FILL, H, W), jnp.float32)
        for i in range(N_FILL_HIST)
    ]

    params = init_params(C_IN, C_KEY, C_OUT, C_MODE, C_FILL,
                         N_KEYS_HIST, N_FILL_HIST, seed=1)

    fwd = jax.jit(forward)
    outs = fwd(params, inp, keys_history, tactic_fillings_history)
    outs = jax.block_until_ready(outs)

    key, output, mode, tactic_fillings, strategy_fillings = outs
    assert key.shape == (N, C_KEY, H, W)
    assert output.shape == (N, C_OUT, H, W)
    assert mode.shape == (N, C_MODE, H, W)
    assert tactic_fillings.shape == (N, C_FILL, H, W)
    assert strategy_fillings.shape == (N, C_FILL, H, W)
    assert all(bool(jnp.all(jnp.isfinite(o))) for o in outs)

    refs = forward_reference(params, inp, keys_history, tactic_fillings_history)
    for got, ref in zip(outs, refs):
        g = got.astype(jnp.float32)
        assert bool(jnp.allclose(g, ref, rtol=2e-2, atol=2e-2)), (
            float(jnp.max(jnp.abs(g - ref))))

    print("KERNEL_OK")
</pallas_src>

<mosaic_0001>
module attributes {stable_mosaic.version = 11 : i64} {
  func.func @_fused_forward_kernel(%arg0: i32, %arg1: i32, %arg2: memref<1x4x256xf32, #tpu.memory_space<vmem>>, %arg3: memref<1x8x256xf32, #tpu.memory_space<vmem>>, %arg4: memref<1x8x256xf32, #tpu.memory_space<vmem>>, %arg5: memref<1x4x256xf32, #tpu.memory_space<vmem>>, %arg6: memref<1x4x256xf32, #tpu.memory_space<vmem>>, %arg7: memref<128x8xbf16, #tpu.memory_space<vmem>>, %arg8: memref<40x1xf32, #tpu.memory_space<vmem>>, %arg9: memref<1x8x256xbf16, #tpu.memory_space<vmem>>, %arg10: memref<1x4x256xbf16, #tpu.memory_space<vmem>>, %arg11: memref<1x4x256xbf16, #tpu.memory_space<vmem>>, %arg12: memref<1x4x256xbf16, #tpu.memory_space<vmem>>, %arg13: memref<1x4x256xbf16, #tpu.memory_space<vmem>>) attributes {dimension_semantics = [#tpu.dimension_semantics<parallel>, #tpu.dimension_semantics<parallel>], iteration_bounds = array<i64: 2, 1>, scalar_prefetch = 0 : i64, scratch_operands = 0 : i64, tpu.core_type = #tpu.core_type<tc>, window_params = [{transform_indices = @transform_0, window_bounds = array<i64: 1, 4, 256>}, {transform_indices = @transform_1, window_bounds = array<i64: 1, 8, 256>}, {transform_indices = @transform_2, window_bounds = array<i64: 1, 8, 256>}, {transform_indices = @transform_3, window_bounds = array<i64: 1, 4, 256>}, {transform_indices = @transform_4, window_bounds = array<i64: 1, 4, 256>}, {pipeline_mode = #tpu.pipeline_mode<synchronous>, transform_indices = @transform_5, window_bounds = array<i64: 128, 8>}, {pipeline_mode = #tpu.pipeline_mode<synchronous>, transform_indices = @transform_6, window_bounds = array<i64: 40, 1>}, {transform_indices = @transform_7, window_bounds = array<i64: 1, 8, 256>}, {transform_indices = @transform_8, window_bounds = array<i64: 1, 4, 256>}, {transform_indices = @transform_9, window_bounds = array<i64: 1, 4, 256>}, {transform_indices = @transform_10, window_bounds = array<i64: 1, 4, 256>}, {transform_indices = @transform_11, window_bounds = array<i64: 1, 4, 256>}]} {
    %c0 = arith.constant 0 : index
    %c0_0 = arith.constant 0 : index
    %0 = vector.load %arg7[%c0, %c0_0] : memref<128x8xbf16, #tpu.memory_space<vmem>>, vector<8x4xbf16>
    %c8 = arith.constant 8 : index
    %c0_1 = arith.constant 0 : index
    %1 = vector.load %arg7[%c8, %c0_1] : memref<128x8xbf16, #tpu.memory_space<vmem>>, vector<8x8xbf16>
    %c16 = arith.constant 16 : index
    %c0_2 = arith.constant 0 : index
    %2 = vector.load %arg7[%c16, %c0_2] : memref<128x8xbf16, #tpu.memory_space<vmem>>, vector<8x8xbf16>
    %c24 = arith.constant 24 : index
    %c0_3 = arith.constant 0 : index
    %3 = vector.load %arg7[%c24, %c0_3] : memref<128x8xbf16, #tpu.memory_space<vmem>>, vector<4x8xbf16>
    %c32 = arith.constant 32 : index
    %c0_4 = arith.constant 0 : index
    %4 = vector.load %arg7[%c32, %c0_4] : memref<128x8xbf16, #tpu.memory_space<vmem>>, vector<4x4xbf16>
    %c40 = arith.constant 40 : index
    %c0_5 = arith.constant 0 : index
    %5 = vector.load %arg7[%c40, %c0_5] : memref<128x8xbf16, #tpu.memory_space<vmem>>, vector<4x8xbf16>
    %c48 = arith.constant 48 : index
    %c0_6 = arith.constant 0 : index
    %6 = vector.load %arg7[%c48, %c0_6] : memref<128x8xbf16, #tpu.memory_space<vmem>>, vector<4x4xbf16>
    %c56 = arith.constant 56 : index
    %c0_7 = arith.constant 0 : index
    %7 = vector.load %arg7[%c56, %c0_7] : memref<128x8xbf16, #tpu.memory_space<vmem>>, vector<4x8xbf16>
    %c64 = arith.constant 64 : index
    %c0_8 = arith.constant 0 : index
    %8 = vector.load %arg7[%c64, %c0_8] : memref<128x8xbf16, #tpu.memory_space<vmem>>, vector<4x4xbf16>
    %c72 = arith.constant 72 : index
    %c0_9 = arith.constant 0 : index
    %9 = vector.load %arg7[%c72, %c0_9] : memref<128x8xbf16, #tpu.memory_space<vmem>>, vector<4x4xbf16>
    %c80 = arith.constant 80 : index
    %c0_10 = arith.constant 0 : index
    %10 = vector.load %arg7[%c80, %c0_10] : memref<128x8xbf16, #tpu.memory_space<vmem>>, vector<4x8xbf16>
    %c88 = arith.constant 88 : index
    %c0_11 = arith.constant 0 : index
    %11 = vector.load %arg7[%c88, %c0_11] : memref<128x8xbf16, #tpu.memory_space<vmem>>, vector<4x8xbf16>
    %c96 = arith.constant 96 : index
    %c0_12 = arith.constant 0 : index
    %12 = vector.load %arg7[%c96, %c0_12] : memref<128x8xbf16, #tpu.memory_space<vmem>>, vector<4x8xbf16>
    %c104 = arith.constant 104 : index
    %c0_13 = arith.constant 0 : index
    %13 = vector.load %arg7[%c104, %c0_13] : memref<128x8xbf16, #tpu.memory_space<vmem>>, vector<4x4xbf16>
    %c112 = arith.constant 112 : index
    %c0_14 = arith.constant 0 : index
    %14 = vector.load %arg7[%c112, %c0_14] : memref<128x8xbf16, #tpu.memory_space<vmem>>, vector<4x4xbf16>
    %c120 = arith.constant 120 : index
    %c0_15 = arith.constant 0 : index
    %15 = vector.load %arg7[%c120, %c0_15] : memref<128x8xbf16, #tpu.memory_space<vmem>>, vector<4x4xbf16>
    %c0_16 = arith.constant 0 : index
    %c0_17 = arith.constant 0 : index
    %16 = vector.load %arg8[%c0_16, %c0_17] : memref<40x1xf32, #tpu.memory_space<vmem>>, vector<8x1xf32>
    %c8_18 = arith.constant 8 : index
    %c0_19 = arith.constant 0 : index
    %17 = vector.load %arg8[%c8_18, %c0_19] : memref<40x1xf32, #tpu.memory_space<vmem>>, vector<4x1xf32>
    %c16_20 = arith.constant 16 : index
    %c0_21 = arith.constant 0 : index
    %18 = vector.load %arg8[%c16_20, %c0_21] : memref<40x1xf32, #tpu.memory_space<vmem>>, vector<4x1xf32>
    %c24_22 = arith.constant 24 : index
    %c0_23 = arith.constant 0 : index
    %19 = vector.load %arg8[%c24_22, %c0_23] : memref<40x1xf32, #tpu.memory_space<vmem>>, vector<4x1xf32>
    %c32_24 = arith.constant 32 : index
    %c0_25 = arith.constant 0 : index
    %20 = vector.load %arg8[%c32_24, %c0_25] : memref<40x1xf32, #tpu.memory_space<vmem>>, vector<4x1xf32>
    %c0_26 = arith.constant 0 : index
    %c0_27 = arith.constant 0 : index
    %c0_28 = arith.constant 0 : index
    %21 = vector.load %arg2[%c0_26, %c0_27, %c0_28] : memref<1x4x256xf32, #tpu.memory_space<vmem>>, vector<1x4x256xf32>
    %22 = vector.shape_cast %21 : vector<1x4x256xf32> to vector<4x256xf32>
    %23 = arith.truncf %22 : vector<4x256xf32> to vector<4x256xbf16>
    %c0_29 = arith.constant 0 : index
    %c0_30 = arith.constant 0 : index
    %c0_31 = arith.constant 0 : index
    %24 = vector.load %arg3[%c0_29, %c0_30, %c0_31] : memref<1x8x256xf32, #tpu.memory_space<vmem>>, vector<1x8x256xf32>
    %25 = vector.shape_cast %24 : vector<1x8x256xf32> to vector<8x256xf32>
    %26 = arith.truncf %25 : vector<8x256xf32> to vector<8x256xbf16>
    %c0_32 = arith.constant 0 : index
    %c0_33 = arith.constant 0 : index
    %c0_34 = arith.constant 0 : index
    %27 = vector.load %arg4[%c0_32, %c0_33, %c0_34] : memref<1x8x256xf32, #tpu.memory_space<vmem>>, vector<1x8x256xf32>
    %28 = vector.shape_cast %27 : vector<1x8x256xf32> to vector<8x256xf32>
    %29 = arith.truncf %28 : vector<8x256xf32> to vector<8x256xbf16>
    %c0_35 = arith.constant 0 : index
    %c0_36 = arith.constant 0 : index
    %c0_37 = arith.constant 0 : index
    %30 = vector.load %arg5[%c0_35, %c0_36, %c0_37] : memref<1x4x256xf32, #tpu.memory_space<vmem>>, vector<1x4x256xf32>
    %31 = vector.shape_cast %30 : vector<1x4x256xf32> to vector<4x256xf32>
    %32 = arith.truncf %31 : vector<4x256xf32> to vector<4x256xbf16>
    %c0_38 = arith.constant 0 : index
    %c0_39 = arith.constant 0 : index
    %c0_40 = arith.constant 0 : index
    %33 = vector.load %arg6[%c0_38, %c0_39, %c0_40] : memref<1x4x256xf32, #tpu.memory_space<vmem>>, vector<1x4x256xf32>
    %34 = vector.shape_cast %33 : vector<1x4x256xf32> to vector<4x256xf32>
    %35 = arith.truncf %34 : vector<4x256xf32> to vector<4x256xbf16>
    %cst = arith.constant dense<0.000000e+00> : vector<8x256xf32>
    %36 = tpu.matmul %0, %23, %cst {dimension_numbers = #tpu.dot_dimension_numbers<[1], [0], [0], [1], [0, 0, 1, 1], [], []>} : vector<8x4xbf16>, vector<4x256xbf16>, vector<8x256xf32> -> vector<8x256xf32>
    %cst_41 = arith.constant dense<0.000000e+00> : vector<8x256xf32>
    %37 = tpu.matmul %1, %26, %cst_41 {dimension_numbers = #tpu.dot_dimension_numbers<[1], [0], [0], [1], [0, 0, 1, 1], [], []>} : vector<8x8xbf16>, vector<8x256xbf16>, vector<8x256xf32> -> vector<8x256xf32>
    %38 = arith.addf %36, %37 : vector<8x256xf32>
    %cst_42 = arith.constant dense<0.000000e+00> : vector<8x256xf32>
    %39 = tpu.matmul %2, %29, %cst_42 {dimension_numbers = #tpu.dot_dimension_numbers<[1], [0], [0], [1], [0, 0, 1, 1], [], []>} : vector<8x8xbf16>, vector<8x256xbf16>, vector<8x256xf32> -> vector<8x256xf32>
    %40 = arith.addf %38, %39 : vector<8x256xf32>
    %41 = vector.broadcast %16 : vector<8x1xf32> to vector<8x256xf32>
    %42 = arith.addf %40, %41 : vector<8x256xf32>
    %cst_43 = arith.constant 0.000000e+00 : f32
    %43 = vector.broadcast %cst_43 : f32 to vector<8x256xf32>
    %44 = arith.maximumf %42, %43 : vector<8x256xf32>
    %45 = arith.truncf %44 : vector<8x256xf32> to vector<8x256xbf16>
    %cst_44 = arith.constant dense<0.000000e+00> : vector<4x256xf32>
    %46 = tpu.matmul %3, %45, %cst_44 {dimension_numbers = #tpu.dot_dimension_numbers<[1], [0], [0], [1], [0, 0, 1, 1], [], []>} : vector<4x8xbf16>, vector<8x256xbf16>, vector<4x256xf32> -> vector<4x256xf32>
    %cst_45 = arith.constant dense<0.000000e+00> : vector<4x256xf32>
    %47 = tpu.matmul %4, %23, %cst_45 {dimension_numbers = #tpu.dot_dimension_numbers<[1], [0], [0], [1], [0, 0, 1, 1], [], []>} : vector<4x4xbf16>, vector<4x256xbf16>, vector<4x256xf32> -> vector<4x256xf32>
    %48 = arith.addf %46, %47 : vector<4x256xf32>
    %49 = vector.broadcast %17 : vector<4x1xf32> to vector<4x256xf32>
    %50 = arith.addf %48, %49 : vector<4x256xf32>
    %cst_46 = arith.constant 0.000000e+00 : f32
    %51 = vector.broadcast %cst_46 : f32 to vector<4x256xf32>
    %52 = arith.maximumf %50, %51 : vector<4x256xf32>
    %53 = arith.truncf %52 : vector<4x256xf32> to vector<4x256xbf16>
    %cst_47 = arith.constant dense<0.000000e+00> : vector<4x256xf32>
    %54 = tpu.matmul %5, %45, %cst_47 {dimension_numbers = #tpu.dot_dimension_numbers<[1], [0], [0], [1], [0, 0, 1, 1], [], []>} : vector<4x8xbf16>, vector<8x256xbf16>, vector<4x256xf32> -> vector<4x256xf32>
    %cst_48 = arith.constant dense<0.000000e+00> : vector<4x256xf32>
    %55 = tpu.matmul %6, %23, %cst_48 {dimension_numbers = #tpu.dot_dimension_numbers<[1], [0], [0], [1], [0, 0, 1, 1], [], []>} : vector<4x4xbf16>, vector<4x256xbf16>, vector<4x256xf32> -> vector<4x256xf32>
    %56 = arith.addf %54, %55 : vector<4x256xf32>
    %57 = vector.broadcast %18 : vector<4x1xf32> to vector<4x256xf32>
    %58 = arith.addf %56, %57 : vector<4x256xf32>
    %cst_49 = arith.constant 0.000000e+00 : f32
    %59 = vector.broadcast %cst_49 : f32 to vector<4x256xf32>
    %60 = arith.maximumf %58, %59 : vector<4x256xf32>
    %cst_50 = arith.constant dense<0.000000e+00> : vector<4x256xf32>
    %61 = tpu.matmul %7, %45, %cst_50 {dimension_numbers = #tpu.dot_dimension_numbers<[1], [0], [0], [1], [0, 0, 1, 1], [], []>} : vector<4x8xbf16>, vector<8x256xbf16>, vector<4x256xf32> -> vector<4x256xf32>
    %cst_51 = arith.constant dense<0.000000e+00> : vector<4x256xf32>
    %62 = tpu.matmul %8, %23, %cst_51 {dimension_numbers = #tpu.dot_dimension_numbers<[1], [0], [0], [1], [0, 0, 1, 1], [], []>} : vector<4x4xbf16>, vector<4x256xbf16>, vector<4x256xf32> -> vector<4x256xf32>
    %63 = arith.addf %61, %62 : vector<4x256xf32>
    %cst_52 = arith.constant dense<0.000000e+00> : vector<4x256xf32>
    %64 = tpu.matmul %9, %53, %cst_52 {dimension_numbers = #tpu.dot_dimension_numbers<[1], [0], [0], [1], [0, 0, 1, 1], [], []>} : vector<4x4xbf16>, vector<4x256xbf16>, vector<4x256xf32> -> vector<4x256xf32>
    %65 = arith.addf %63, %64 : vector<4x256xf32>
    %66 = vector.broadcast %19 : vector<4x1xf32> to vector<4x256xf32>
    %67 = arith.addf %65, %66 : vector<4x256xf32>
    %cst_53 = arith.constant 0.000000e+00 : f32
    %68 = vector.broadcast %cst_53 : f32 to vector<4x256xf32>
    %69 = arith.maximumf %67, %68 : vector<4x256xf32>
    %70 = arith.truncf %69 : vector<4x256xf32> to vector<4x256xbf16>
    %cst_54 = arith.constant dense<0.000000e+00> : vector<4x256xf32>
    %71 = tpu.matmul %10, %45, %cst_54 {dimension_numbers = #tpu.dot_dimension_numbers<[1], [0], [0], [1], [0, 0, 1, 1], [], []>} : vector<4x8xbf16>, vector<8x256xbf16>, vector<4x256xf32> -> vector<4x256xf32>
    %cst_55 = arith.constant dense<0.000000e+00> : vector<4x256xf32>
    %72 = tpu.matmul %11, %26, %cst_55 {dimension_numbers = #tpu.dot_dimension_numbers<[1], [0], [0], [1], [0, 0, 1, 1], [], []>} : vector<4x8xbf16>, vector<8x256xbf16>, vector<4x256xf32> -> vector<4x256xf32>
    %73 = arith.addf %71, %72 : vector<4x256xf32>
    %cst_56 = arith.constant dense<0.000000e+00> : vector<4x256xf32>
    %74 = tpu.matmul %12, %29, %cst_56 {dimension_numbers = #tpu.dot_dimension_numbers<[1], [0], [0], [1], [0, 0, 1, 1], [], []>} : vector<4x8xbf16>, vector<8x256xbf16>, vector<4x256xf32> -> vector<4x256xf32>
    %75 = arith.addf %73, %74 : vector<4x256xf32>
    %cst_57 = arith.constant dense<0.000000e+00> : vector<4x256xf32>
    %76 = tpu.matmul %13, %32, %cst_57 {dimension_numbers = #tpu.dot_dimension_numbers<[1], [0], [0], [1], [0, 0, 1, 1], [], []>} : vector<4x4xbf16>, vector<4x256xbf16>, vector<4x256xf32> -> vector<4x256xf32>
    %77 = arith.addf %75, %76 : vector<4x256xf32>
    %cst_58 = arith.constant dense<0.000000e+00> : vector<4x256xf32>
    %78 = tpu.matmul %14, %35, %cst_58 {dimension_numbers = #tpu.dot_dimension_numbers<[1], [0], [0], [1], [0, 0, 1, 1], [], []>} : vector<4x4xbf16>, vector<4x256xbf16>, vector<4x256xf32> -> vector<4x256xf32>
    %79 = arith.addf %77, %78 : vector<4x256xf32>
    %cst_59 = arith.constant dense<0.000000e+00> : vector<4x256xf32>
    %80 = tpu.matmul %15, %70, %cst_59 {dimension_numbers = #tpu.dot_dimension_numbers<[1], [0], [0], [1], [0, 0, 1, 1], [], []>} : vector<4x4xbf16>, vector<4x256xbf16>, vector<4x256xf32> -> vector<4x256xf32>
    %81 = arith.addf %79, %80 : vector<4x256xf32>
    %82 = vector.broadcast %20 : vector<4x1xf32> to vector<4x256xf32>
    %83 = arith.addf %81, %82 : vector<4x256xf32>
    %cst_60 = arith.constant 0.000000e+00 : f32
    %84 = vector.broadcast %cst_60 : f32 to vector<4x256xf32>
    %85 = arith.maximumf %83, %84 : vector<4x256xf32>
    %86 = arith.truncf %44 : vector<8x256xf32> to vector<8x256xbf16>
    %c0_61 = arith.constant 0 : index
    %c0_62 = arith.constant 0 : index
    %c0_63 = arith.constant 0 : index
    %87 = vector.load %arg9[%c0_61, %c0_62, %c0_63] : memref<1x8x256xbf16, #tpu.memory_space<vmem>>, vector<1x8x256xbf16>
    %88 = vector.shape_cast %87 : vector<1x8x256xbf16> to vector<8x256xbf16>
    %89 = vector.shape_cast %86 : vector<8x256xbf16> to vector<1x8x256xbf16>
    tpu.vector_store %arg9[%c0_61, %c0_62, %c0_63], %89 {strides = array<i32>} : memref<1x8x256xbf16, #tpu.memory_space<vmem>>, vector<1x8x256xbf16>,
    %90 = arith.truncf %52 : vector<4x256xf32> to vector<4x256xbf16>
    %c0_64 = arith.constant 0 : index
    %c0_65 = arith.constant 0 : index
    %c0_66 = arith.constant 0 : index
    %91 = vector.load %arg10[%c0_64, %c0_65, %c0_66] : memref<1x4x256xbf16, #tpu.memory_space<vmem>>, vector<1x4x256xbf16>
    %92 = vector.shape_cast %91 : vector<1x4x256xbf16> to vector<4x256xbf16>
    %93 = vector.shape_cast %90 : vector<4x256xbf16> to vector<1x4x256xbf16>
    tpu.vector_store %arg10[%c0_64, %c0_65, %c0_66], %93 {strides = array<i32>} : memref<1x4x256xbf16, #tpu.memory_space<vmem>>, vector<1x4x256xbf16>,
    %94 = arith.truncf %60 : vector<4x256xf32> to vector<4x256xbf16>
    %c0_67 = arith.constant 0 : index
    %c0_68 = arith.constant 0 : index
    %c0_69 = arith.constant 0 : index
    %95 = vector.load %arg11[%c0_67, %c0_68, %c0_69] : memref<1x4x256xbf16, #tpu.memory_space<vmem>>, vector<1x4x256xbf16>
    %96 = vector.shape_cast %95 : vector<1x4x256xbf16> to vector<4x256xbf16>
    %97 = vector.shape_cast %94 : vector<4x256xbf16> to vector<1x4x256xbf16>
    tpu.vector_store %arg11[%c0_67, %c0_68, %c0_69], %97 {strides = array<i32>} : memref<1x4x256xbf16, #tpu.memory_space<vmem>>, vector<1x4x256xbf16>,
    %98 = arith.truncf %69 : vector<4x256xf32> to vector<4x256xbf16>
    %c0_70 = arith.constant 0 : index
    %c0_71 = arith.constant 0 : index
    %c0_72 = arith.constant 0 : index
    %99 = vector.load %arg12[%c0_70, %c0_71, %c0_72] : memref<1x4x256xbf16, #tpu.memory_space<vmem>>, vector<1x4x256xbf16>
    %100 = vector.shape_cast %99 : vector<1x4x256xbf16> to vector<4x256xbf16>
    %101 = vector.shape_cast %98 : vector<4x256xbf16> to vector<1x4x256xbf16>
    tpu.vector_store %arg12[%c0_70, %c0_71, %c0_72], %101 {strides = array<i32>} : memref<1x4x256xbf16, #tpu.memory_space<vmem>>, vector<1x4x256xbf16>,
    %102 = arith.truncf %85 : vector<4x256xf32> to vector<4x256xbf16>
    %c0_73 = arith.constant 0 : index
    %c0_74 = arith.constant 0 : index
    %c0_75 = arith.constant 0 : index
    %103 = vector.load %arg13[%c0_73, %c0_74, %c0_75] : memref<1x4x256xbf16, #tpu.memory_space<vmem>>, vector<1x4x256xbf16>
    %104 = vector.shape_cast %103 : vector<1x4x256xbf16> to vector<4x256xbf16>
    %105 = vector.shape_cast %102 : vector<4x256xbf16> to vector<1x4x256xbf16>
    tpu.vector_store %arg13[%c0_73, %c0_74, %c0_75], %105 {strides = array<i32>} : memref<1x4x256xbf16, #tpu.memory_space<vmem>>, vector<1x4x256xbf16>,
    return
  }
  func.func @transform_0(%arg0: i32, %arg1: i32) -> (i32, i32, i32) {
    %c0_i32 = arith.constant 0 : i32
    %c0_i32_0 = arith.constant 0 : i32
    return %arg0, %c0_i32, %arg1 : i32, i32, i32
  }
  func.func @transform_1(%arg0: i32, %arg1: i32) -> (i32, i32, i32) {
    %c0_i32 = arith.constant 0 : i32
    %c0_i32_0 = arith.constant 0 : i32
    return %arg0, %c0_i32, %arg1 : i32, i32, i32
  }
  func.func @transform_2(%arg0: i32, %arg1: i32) -> (i32, i32, i32) {
    %c0_i32 = arith.constant 0 : i32
    %c0_i32_0 = arith.constant 0 : i32
    return %arg0, %c0_i32, %arg1 : i32, i32, i32
  }
  func.func @transform_3(%arg0: i32, %arg1: i32) -> (i32, i32, i32) {
    %c0_i32 = arith.constant 0 : i32
    %c0_i32_0 = arith.constant 0 : i32
    return %arg0, %c0_i32, %arg1 : i32, i32, i32
  }
  func.func @transform_4(%arg0: i32, %arg1: i32) -> (i32, i32, i32) {
    %c0_i32 = arith.constant 0 : i32
    %c0_i32_0 = arith.constant 0 : i32
    return %arg0, %c0_i32, %arg1 : i32, i32, i32
  }
  func.func @transform_5(%arg0: i32, %arg1: i32) -> (i32, i32) {
    %c0_i32 = arith.constant 0 : i32
    %c0_i32_0 = arith.constant 0 : i32
    %c0_i32_1 = arith.constant 0 : i32
    return %c0_i32, %c0_i32_0 : i32, i32
  }
  func.func @transform_6(%arg0: i32, %arg1: i32) -> (i32, i32) {
    %c0_i32 = arith.constant 0 : i32
    %c0_i32_0 = arith.constant 0 : i32
    %c0_i32_1 = arith.constant 0 : i32
    return %c0_i32, %c0_i32_0 : i32, i32
  }
  func.func @transform_7(%arg0: i32, %arg1: i32) -> (i32, i32, i32) {
    %c0_i32 = arith.constant 0 : i32
    %c0_i32_0 = arith.constant 0 : i32
    return %arg0, %c0_i32, %arg1 : i32, i32, i32
  }
  func.func @transform_8(%arg0: i32, %arg1: i32) -> (i32, i32, i32) {
    %c0_i32 = arith.constant 0 : i32
    %c0_i32_0 = arith.constant 0 : i32
    return %arg0, %c0_i32, %arg1 : i32, i32, i32
  }
  func.func @transform_9(%arg0: i32, %arg1: i32) -> (i32, i32, i32) {
    %c0_i32 = arith.constant 0 : i32
    %c0_i32_0 = arith.constant 0 : i32
    return %arg0, %c0_i32, %arg1 : i32, i32, i32
  }
  func.func @transform_10(%arg0: i32, %arg1: i32) -> (i32, i32, i32) {
    %c0_i32 = arith.constant 0 : i32
    %c0_i32_0 = arith.constant 0 : i32
    return %arg0, %c0_i32, %arg1 : i32, i32, i32
  }
  func.func @transform_11(%arg0: i32, %arg1: i32) -> (i32, i32, i32) {
    %c0_i32 = arith.constant 0 : i32
    %c0_i32_0 = arith.constant 0 : i32
    return %arg0, %c0_i32, %arg1 : i32, i32, i32
  }
}

</mosaic_0001>

<bundles_post_ra>
// kernel: forward.1
= control target key start
LH: loop header
LB: loop body
LE: loop exit
PB: predicated region body
PF: predicated region fallthrough
CT: control target
= control target key end

     0   :  { %s2142_s17 = smov 0   ;;  %s2144_s18 = smov 0   ;;  %s2369_s0 = inlined_call_operand.vmem [shape: f32[2,4,256], index: 0, kind: input, shape index: {}]   ;;  %s2370_s1 = inlined_call_operand.vmem [shape: f32[2,8,256], index: 1, kind: input, shape index: {}]   ;;  %s2371_s2 = inlined_call_operand.vmem [shape: f32[2,8,256], index: 2, kind: input, shape index: {}]   ;;  %s2372_s3 = inlined_call_operand.vmem [shape: f32[2,4,256], index: 3, kind: input, shape index: {}]   ;;  %s2373_s4 = inlined_call_operand.vmem [shape: f32[2,4,256], index: 4, kind: input, shape index: {}]   ;;  %s2374_s5 = inlined_call_operand.vmem [shape: bf16[128,8], index: 5, kind: input, shape index: {}]   ;;  %s2375_s6 = inlined_call_operand.vmem [shape: f32[40,1], index: 6, kind: input, shape index: {}]   ;;  %s2376_s7 = inlined_call_operand.vmem [shape: bf16[2,8,256], index: 7, kind: output, shape index: {0}]   ;;  %s2377_s8 = inlined_call_operand.vmem [shape: bf16[2,4,256], index: 8, kind: output, shape index: {1}]   ;;  %s2378_s9 = inlined_call_operand.vmem [shape: bf16[2,4,256], index: 9, kind: output, shape index: {2}]   ;;  %s2379_s10 = inlined_call_operand.vmem [shape: bf16[2,4,256], index: 10, kind: output, shape index: {3}]   ;;  %s2380_s11 = inlined_call_operand.vmem [shape: bf16[2,4,256], index: 11, kind: output, shape index: {4}]  }
   0x1   :  { %s2146_s19 = smov 0  }
   0x2 LB: > { %s34_s20 = sadd.s32 1, %s2075_s18  ;;  %p1952_p0 = scmp.ge.s32.totalorder %s2079_s19, 1  ;;  %s2079_s19 = sphi %s2146_s19, %s22_s19   ;;  %s2075_s18 = sphi %s2144_s18, %s2382_s18   ;;  %s2071_s17 = sphi %s2142_s17, %s2381_s17  }
   0x3   : > { %p36_p1 = scmp.ge.s32.totalorder %s34_s20, 2  ;;  %p443_p2 = scmp.lt.s32.totalorder %s2079_s19, 3 }
   0x5   : > { %s2384_s20 = smov (%p36_p1, %s34_s20), 0  ;;  %p444_p3 = pnand %p1952_p0, %p443_p2 }
   0x6   : > { %p564_p4 = scmp.lt.s32.totalorder (!%p444_p3), %s2071_s17, 1 }
   0x7   : > { %447 = sbr.rel (%p444_p3) target bundleno = 855 (0x357), region = 48 }
   0xc   : > { %v2081_v0 = vmov 0   ;;  %s2386_s17 = smov (!%p564_p4, %s2071_s17), 1  ;;  %v680_v1 = vld [vmem:[%s2375_s6] sm:$0xff]  ;;  %v681_v2 = vld [vmem:[%s2375_s6 + $0x8] sm:$0xf]  ;;  %vm715_vm0 = vcmask 1043456  }
   0xd   : > { %754 = vmatprep.mubr.bf16.mxu0 %v2081_v0  ;;  %806 = vmatprep.mubr.bf16.mxu1 %v2081_v0  ;;  %s2170_s23 = sshll.u32 %s2386_s17, 3  ;;  %s2017_s24 = sshll.u32 %s2386_s17, 4  ;;  %vm767_vm1 = vcmask 1041408   ;;  %v684_v14 = vld [vmem:[%s2375_s6 + $0x20] sm:$0xf]  ;;  %vm711_vm2 = vcmask 64512  }
   0xe   : > { %2052 = vset.pattern.permute.xlu0 %v2081_v0  ;;  %2053 = vset.pattern.permute.xlu1 %v2081_v0  ;;  %s581_s29 = scalar_lea.vmem %s2370_s1, %s2017_s24  ;;  %s591_s13 = scalar_lea.vmem %s2371_s2, %s2017_s24  ;;  %v665_v18 = vld [vmem:[%s2374_s5 + $0x4] sm:$0xf]  ;;  %v664_v20 = vld [vmem:[%s2374_s5] sm:$0xf]  ;;  %vm763_vm3 = vcmask 31744  }
   0xf   : > { %869 = vperm.xlu0 %2052, %v680_v1   ;;  %v692_v3 = vld [vmem:[%s581_s29 + $0x8] sm:$0xff]  ;;  %v691_v5 = vld [vmem:[%s581_s29] sm:$0xff]  ;;  %s571_s16 = scalar_lea.vmem %s2369_s0, %s2170_s23  ;;  %v668_v22 = vld [vmem:[%s2374_s5 + $0x10] sm:$0x3]  ;;  %s621_s21 = scalar_lea.vmem %s2376_s7, %s2170_s23 }
  0x10   : > { %v696_v4 = vld [vmem:[%s591_s13 + $0x8] sm:$0xff]  ;;  %v2186_v6 = vpack.c.bf16 %v692_v3, %v692_v3  ;;  %v693_v8 = vpack.c.bf16 %v691_v5, %v691_v5  ;;  %v685_v9 = vld [vmem:[%s571_s16] sm:$0xff]  ;;  %v670_v23 = vld [vmem:[%s2374_s5 + $0x18] sm:$0x3]  ;;  %s2296_s25 = sshll.u32 %s2386_s17, 2  ;;  %s601_s22 = scalar_lea.vmem %s2372_s3, %s2170_s23 }
  0x11   : > { %v2188_v7 = vpack.c.bf16 %v696_v4, %v696_v4  ;;  %v695_v10 = vld [vmem:[%s591_s13] sm:$0xff]  ;;  %v687_v11 = vcombine.high %v685_v9, %v685_v9  ;;  %v689_v12 = vpack.c.bf16 %v685_v9, %v685_v9  ;;  %v666_v21 = vld [vmem:[%s2374_s5 + $0x8] sm:$0xf]  ;;  %v667_v49 = vld [vmem:[%s2374_s5 + $0xc] sm:$0x3]  ;;  %s631_s28 = scalar_lea.vmem %s2377_s8, %s2296_s25  ;;  %s641_s13 = scalar_lea.vmem %s2378_s9, %s2296_s25 }
  0x12   : > { %v697_v13 = vpack.c.bf16 %v695_v10, %v695_v10  ;;  %1973 = vmatprep.subr.msk.bf16.mxu0 %vm715_vm0, %v2186_v6  ;;  %v2196_v15 = vsel %vm715_vm0, %v693_v8, 0  ;;  %v669_v50 = vld [vmem:[%s2374_s5 + $0x14] sm:$0x3]  ;;  %v672_v55 = vld [vmem:[%s2374_s5 + $0x20] sm:$0x3]  ;;  %s611_s27 = scalar_lea.vmem %s2373_s4, %s2170_s23 }
  0x13   : > { %974 = vperm.xlu0 %2052, %v681_v2   ;;  %737 = vmatpush1.bf16.msra.mxu0 %v2196_v15  ;;  %v690_v16 = vpack.c.bf16 %v687_v11, %v687_v11  ;;  %v769_v17 = vsel %vm767_vm1, %v689_v12, 0  ;;  %v671_v56 = vld [vmem:[%s2374_s5 + $0x1c] sm:$0x3]  ;;  %v683_v57 = vld [vmem:[%s2375_s6 + $0x18] sm:$0xf] }
  0x14   : > { %1977 = vmatprep.subr.msk.bf16.mxu0 %vm715_vm0, %v2188_v7  ;;  %v2206_v19 = vsel %vm715_vm0, %v697_v13, 0  ;;  %1222 = vperm.xlu1 %2053, %v683_v57   ;;  %v682_v59 = vld [vmem:[%s2375_s6 + $0x10] sm:$0xf]  ;;  %v675_v63 = vld [vmem:[%s2374_s5 + $0x2c] sm:$0x3] }
  0x15   : > { %1975 = vmatprep.subr.msk.bf16.mxu1 %vm767_vm1, %v690_v16  ;;  %v676_v1 = vld [vmem:[%s2374_s5 + $0x30] sm:$0x3] }
  0x16   : > { %789 = vmatpush1.bf16.msra.mxu1 %v769_v17  ;;  %1974 = vmatmul.mubr.msk.bf16.vlgmr.msra.gmra.mxu0 %vm711_vm2, %v665_v18 }
  0x17   : > { %1523 = vperm.xlu0 %2052, %v684_v14   ;;  %839 = vmatpush1.bf16.msra.mxu0 %v2206_v19 }
  0x18   : > { %856 = vmatprep.mubr.bf16.mxu0 %v2081_v0  ;;  %1979 = vmatprep.subr.msk.bf16.mxu1 %vm767_vm1, %v690_v16 }
  0x19   : > { %1976 = vmatmul.mubr.msk.bf16.vlgmr.msra.gmra.mxu1 %vm763_vm3, %v664_v20  ;;  %1073 = vperm.xlu1 %2053, %v682_v59  }
  0x1a   : > { %896 = vmatpush1.bf16.msra.mxu1 %v769_v17  ;;  %913 = vmatprep.mubr.bf16.mxu1 %v2081_v0 }
  0x1b   : > { %1983 = vmatprep.subr.msk.bf16.mxu1 %vm767_vm1, %v690_v16 }
  0x1e   : > { %1978 = vmatmul.mubr.msk.bf16.vlgmr.msra.gmra.mxu0 %vm711_vm2, %v666_v21 }
  0x1f   : > { %963 = vmatprep.mubr.bf16.mxu0 %v2081_v0 }
  0x21   : > { %1980 = vmatmul.mubr.msk.bf16.vlgmr.msra.gmra.mxu1 %vm763_vm3, %v668_v22 }
  0x22   : > { %1001 = vmatpush1.bf16.msra.mxu1 %v769_v17  ;;  %1018 = vmatprep.mubr.bf16.mxu1 %v2081_v0 }
  0x23   : > { %1987 = vmatprep.subr.msk.bf16.mxu1 %vm767_vm1, %v690_v16 }
  0x29   : > { %1984 = vmatmul.mubr.msk.bf16.vlgmr.msra.gmra.mxu1 %vm763_vm3, %v670_v23 }
  0x2a   : > { %1098 = vmatpush1.bf16.msra.mxu1 %v769_v17  ;;  %1115 = vmatprep.mubr.bf16.mxu1 %v2081_v0 }
  0x31   : > { %1988 = vmatmul.mubr.msk.bf16.vlgmr.msra.gmra.mxu1 %vm763_vm3, %v672_v55 }
  0x32   : > { %1209 = vmatprep.mubr.bf16.mxu1 %v2081_v0 }
  0x8a   : > { %v870_v36 = vpop.permute.xlu0 %869 }
  0x8e   : > { %v975_v4 = vpop.permute.xlu0 %974 }
  0x8f   : > { %v2307_v20 = vpop.permute.xlu1 %1222 }
  0xd6   : > { %v756_v24 = vpop.f32.mrf.mxu0 }
  0xd8   : > { %v758_v25 = vpop.f32.mrf.mxu0 }
  0xd9   : > { %v808_v26 = vpop.f32.mrf.mxu1 }
  0xda   : > { %v760_v27 = vpop.f32.mrf.mxu0  ;;  %v809_v30 = vadd.f32 %v808_v26, %v756_v24 }
  0xdb   : > { %v810_v28 = vpop.f32.mrf.mxu1 }
  0xdc   : > { %v761_v29 = vpop.f32.mrf.mxu0  ;;  %v811_v33 = vadd.f32 %v810_v28, %v758_v25  ;;  %v1074_v25 = vpop.permute.xlu1 %1073 }
  0xdd   : > { %v812_v31 = vpop.f32.mrf.mxu1 }
  0xde   : > { %v858_v32 = vpop.f32.mrf.mxu0 }
  0xdf   : > { %v813_v34 = vpop.f32.mrf.mxu1  ;;  %v865_v35 = vadd.f32 %v858_v32, %v809_v30  ;;  %v674_v30 = vld [vmem:[%s2374_s5 + $0x28] sm:$0x3] }
  0xe0   : > { %v860_v37 = vpop.f32.mrf.mxu0 }
  0xe1   : > { %v872_v38 = vadd.f32 %v870_v36, %v865_v35  ;;  %v866_v39 = vadd.f32 %v860_v37, %v811_v33  ;;  %v915_v51 = vpop.f32.mrf.mxu1 }
  0xe2   : > { %v862_v40 = vpop.f32.mrf.mxu0 }
  0xe3   : > { %v874_v41 = vmax.f32 %v872_v38, 0.0  ;;  %v873_v42 = vadd.f32 %v870_v36, %v866_v39  ;;  %v917_v52 = vpop.f32.mrf.mxu1  ;;  %v699_v36 = vld [vmem:[%s601_s22] sm:$0xff]  ;;  %s661_s22 = scalar_lea.vmem %s2380_s11, %s2296_s25 }
  0xe4   : > { %v863_v43 = vpop.f32.mrf.mxu0  ;;  %v701_v38 = vcombine.high %v699_v36, %v699_v36 }
  0xe5   : > { %v876_v44 = vpack.c.bf16 %v874_v41, %v874_v41  ;;  %v875_v45 = vmax.f32 %v873_v42, 0.0  ;;  %v919_v53 = vpop.f32.mrf.mxu1 }
  0xe6   : > { %v704_v43 = vpack.c.bf16 %v701_v38, %v701_v38  ;;  %v678_v53 = vld [vmem:[%s2374_s5 + $0x38] sm:$0x3] }
  0xe7   : > { %v2239_v46 = vpack.c.bf16 %v875_v45, %v875_v45  ;;  %v2026_v47 = vpack.c.bf16 %v875_v45, %v874_v41  ;;  %v2244_v48 = vsel %vm715_vm0, %v876_v44, 0  ;;  %v920_v54 = vpop.f32.mrf.mxu1  ;;  %v705_v41 = vld [vmem:[%s611_s27] sm:$0xff]  ;;  %v703_v44 = vpack.c.bf16 %v699_v36, %v699_v36 }
  0xe8   : > { %v707_v45 = vcombine.high %v705_v41, %v705_v41 }
  0xe9   : > { %1536 = vst [vmem:[%s621_s21] sm:$0xff] %v2026_v47  ;;  %1981 = vmatprep.subr.msk.bf16.mxu0 %vm715_vm0, %v2239_v46  ;;  %v1020_v58 = vpop.f32.mrf.mxu1  ;;  %v1369_v47 = vsel %vm767_vm1, %v703_v44, 0 }
  0xea   : > { %946 = vmatpush1.bf16.msra.mxu0 %v2244_v48 }
  0xeb   : > { %1985 = vmatprep.subr.msk.bf16.mxu0 %vm715_vm0, %v2239_v46  ;;  %v1022_v60 = vpop.f32.mrf.mxu1 }
  0xed   : > { %1982 = vmatmul.mubr.msk.bf16.vlgmr.msra.gmra.mxu0 %vm711_vm2, %v667_v49  ;;  %v1024_v61 = vpop.f32.mrf.mxu1  ;;  %v709_v49 = vpack.c.bf16 %v705_v41, %v705_v41 }
  0xee   : > { %1045 = vmatpush1.bf16.msra.mxu0 %v2244_v48  ;;  %1062 = vmatprep.mubr.bf16.mxu0 %v2081_v0 }
  0xef   : > { %1989 = vmatprep.subr.msk.bf16.mxu0 %vm715_vm0, %v2239_v46  ;;  %v1025_v62 = vpop.f32.mrf.mxu1 }
  0xf1   : > { %v1117_v32 = vpop.f32.mrf.mxu1 }
  0xf3   : > { %v1119_v33 = vpop.f32.mrf.mxu1 }
  0xf5   : > { %1986 = vmatmul.mubr.msk.bf16.vlgmr.msra.gmra.mxu0 %vm711_vm2, %v669_v50  ;;  %v1121_v34 = vpop.f32.mrf.mxu1 }
  0xf6   : > { %1142 = vmatpush1.bf16.msra.mxu0 %v2244_v48  ;;  %1159 = vmatprep.mubr.bf16.mxu0 %v2081_v0 }
  0xf7   : > { %1993 = vmatprep.subr.msk.bf16.mxu0 %vm715_vm0, %v2186_v6  ;;  %v1122_v39 = vpop.f32.mrf.mxu1 }
  0xfd   : > { %1990 = vmatmul.mubr.msk.bf16.vlgmr.msra.gmra.mxu0 %vm711_vm2, %v671_v56 }
  0xfe   : > { %1249 = vmatpush1.bf16.msra.mxu0 %v2196_v15  ;;  %1266 = vmatprep.mubr.bf16.mxu0 %v2081_v0 }
  0xff   : > { %1997 = vmatprep.subr.msk.bf16.mxu0 %vm715_vm0, %v2188_v7 }
 0x105   : > { %1994 = vmatmul.mubr.msk.bf16.vlgmr.msra.gmra.mxu0 %vm711_vm2, %v675_v63 }
 0x106   : > { %1337 = vmatpush1.bf16.msra.mxu0 %v2206_v19  ;;  %1354 = vmatprep.mubr.bf16.mxu0 %v2081_v0  ;;  %v673_v19 = vld [vmem:[%s2374_s5 + $0x24] sm:$0x3] }
 0x10d   : > { %1998 = vmatmul.mubr.msk.bf16.vlgmr.msra.gmra.mxu0 %vm711_vm2, %v676_v1 }
 0x10e   : > { %1458 = vmatprep.mubr.bf16.mxu0 %v2081_v0 }
 0x1ad   : > { %v965_v2 = vpop.f32.mrf.mxu0 }
 0x1ae   : > { %v966_v3 = vadd.f32 %v965_v2, %v915_v51  ;;  %v1421_v51 = vsel %vm767_vm1, %v709_v49, 0 }
 0x1af   : > { %v967_v5 = vpop.f32.mrf.mxu0 }
 0x1b0   : > { %v977_v6 = vadd.f32 %v975_v4, %v966_v3  ;;  %v968_v7 = vadd.f32 %v967_v5, %v917_v52  ;;  %v677_v52 = vld [vmem:[%s2374_s5 + $0x34] sm:$0x3] }
 0x1b1   : > { %v969_v8 = vpop.f32.mrf.mxu0 }
 0x1b2   : > { %v979_v9 = vmax.f32 %v977_v6, 0.0  ;;  %v978_v10 = vadd.f32 %v975_v4, %v968_v7 }
 0x1b3   : > { %v970_v11 = vpop.f32.mrf.mxu0 }
 0x1b4   : > { %v981_v12 = vpack.c.bf16 %v979_v9, %v979_v9  ;;  %v980_v13 = vmax.f32 %v978_v10, 0.0 }
 0x1b5   : > { %v1064_v14 = vpop.f32.mrf.mxu0 }
 0x1b6   : > { %v982_v15 = vpack.c.bf16 %v980_v13, %v980_v13  ;;  %v2006_v16 = vpack.c.bf16 %v980_v13, %v979_v9  ;;  %v1172_v18 = vsel %vm767_vm1, %v981_v12, 0  ;;  %v1065_v22 = vadd.f32 %v1064_v14, %v1020_v58  ;;  %v679_v14 = vld [vmem:[%s2374_s5 + $0x3c] sm:$0x3] }
 0x1b7   : > { %v1066_v17 = vpop.f32.mrf.mxu0 }
 0x1b8   : > { %2007 = vst.sshfl [vmem:[%s631_s28] sm:$0x33 pattern:$0x76325410] %v2006_v16  ;;  %1991 = vmatprep.subr.msk.bf16.mxu1 %vm767_vm1, %v982_v15  ;;  %v1067_v23 = vadd.f32 %v1066_v17, %v1022_v60  ;;  %v1076_v26 = vadd.f32 %v1074_v25, %v1065_v22 }
 0x1b9   : > { %1192 = vmatpush1.bf16.msra.mxu1 %v1172_v18  ;;  %v1068_v21 = vpop.f32.mrf.mxu0 }
 0x1ba   : > { %1995 = vmatprep.subr.msk.bf16.mxu1 %vm715_vm0, %v2239_v46  ;;  %v1077_v27 = vadd.f32 %v1074_v25, %v1067_v23  ;;  %v1078_v28 = vmax.f32 %v1076_v26, 0.0 }
 0x1bb   : > { %v1069_v24 = vpop.f32.mrf.mxu0 }
 0x1bc   : > { %1992 = vmatmul.mubr.msk.bf16.vlgmr.msra.gmra.mxu1 %vm763_vm3, %v673_v19  ;;  %v1079_v29 = vmax.f32 %v1077_v27, 0.0 }
 0x1bd   : > { %1293 = vmatpush1.bf16.msra.mxu1 %v2244_v48  ;;  %1310 = vmatprep.mubr.bf16.mxu1 %v2081_v0  ;;  %v1161_v35 = vpop.f32.mrf.mxu0  ;;  %v710_v48 = vpack.c.bf16 %v707_v45, %v707_v45 }
 0x1be   : > { %v2008_v31 = vpack.c.bf16 %v1079_v29, %v1078_v28  ;;  %v1162_v37 = vadd.f32 %v1161_v35, %v1117_v32  ;;  %1999 = vmatprep.subr.msk.bf16.mxu1 %vm767_vm1, %v704_v43  ;;  %v1524_v35 = vpop.permute.xlu0 %1523 }
 0x1bf   : > { %v1163_v40 = vpop.f32.mrf.mxu0  ;;  %2001 = vmatprep.subr.msk.bf16.mxu0 %vm767_vm1, %v710_v48 }
 0x1c0   : > { %2009 = vst.sshfl [vmem:[%s641_s13] sm:$0x33 pattern:$0x76325410] %v2008_v31  ;;  %v1164_v42 = vadd.f32 %v1163_v40, %v1119_v33  ;;  %1441 = vmatpush1.bf16.msra.mxu0 %v1421_v51  ;;  %s651_s13 = scalar_lea.vmem %s2379_s10, %s2296_s25 }
 0x1c1   : > { %v1165_v46 = vpop.f32.mrf.mxu0 }
 0x1c3   : > { %v1166_v50 = vpop.f32.mrf.mxu0  ;;  %2002 = vmatmul.mubr.msk.bf16.vlgmr.msra.gmra.mxu0 %vm763_vm3, %v678_v53 }
 0x1c4   : > { %1996 = vmatmul.mubr.msk.bf16.vlgmr.msra.gmra.mxu1 %vm711_vm2, %v674_v30 }
 0x1c5   : > { %1406 = vmatprep.mubr.bf16.mxu1 %v2081_v0  ;;  %1389 = vmatpush1.bf16.msra.mxu1 %v1369_v47  ;;  %v1268_v54 = vpop.f32.mrf.mxu0 }
 0x1c7   : > { %v1270_v55 = vpop.f32.mrf.mxu0 }
 0x1c9   : > { %v1272_v56 = vpop.f32.mrf.mxu0 }
 0x1cb   : > { %v1273_v57 = vpop.f32.mrf.mxu0 }
 0x1cc   : > { %2000 = vmatmul.mubr.msk.bf16.vlgmr.msra.gmra.mxu1 %vm763_vm3, %v677_v52 }
 0x1cd   : > { %1510 = vmatprep.mubr.bf16.mxu1 %v2081_v0  ;;  %v1356_v58 = vpop.f32.mrf.mxu0 }
 0x1cf   : > { %v1358_v59 = vpop.f32.mrf.mxu0 }
 0x1d1   : > { %v1360_v60 = vpop.f32.mrf.mxu0 }
 0x1d3   : > { %v1361_v61 = vpop.f32.mrf.mxu0 }
 0x27c   : > { %v1211_v62 = vpop.f32.mrf.mxu1 }
 0x27d   : > { %v1218_v63 = vadd.f32 %v1211_v62, %v1162_v37 }
 0x27e   : > { %v1213_v1 = vpop.f32.mrf.mxu1 }
 0x27f   : > { %v1225_v2 = vadd.f32 %v2307_v20, %v1218_v63  ;;  %v1219_v3 = vadd.f32 %v1213_v1, %v1164_v42 }
 0x280   : > { %v1215_v4 = vpop.f32.mrf.mxu1 }
 0x281   : > { %v1227_v5 = vmax.f32 %v1225_v2, 0.0  ;;  %v1226_v0 = vadd.f32 %v2307_v20, %v1219_v3 }
 0x282   : > { %v1216_v6 = vpop.f32.mrf.mxu1 }
 0x283   : > { %v1229_v7 = vpack.c.bf16 %v1227_v5, %v1227_v5  ;;  %v1228_v8 = vmax.f32 %v1226_v0, 0.0  ;;  %v1460_v24 = vpop.f32.mrf.mxu0 }
 0x284   : > { %v1312_v9 = vpop.f32.mrf.mxu1 }
 0x285   : > { %v1230_v10 = vpack.c.bf16 %v1228_v8, %v1228_v8  ;;  %v2010_v11 = vpack.c.bf16 %v1228_v8, %v1227_v5  ;;  %v1473_v13 = vsel %vm767_vm1, %v1229_v7, 0  ;;  %v1313_v17 = vadd.f32 %v1312_v9, %v1268_v54  ;;  %v1462_v27 = vpop.f32.mrf.mxu0 }
 0x286   : > { %v1314_v12 = vpop.f32.mrf.mxu1 }
 0x287   : > { %2011 = vst.sshfl [vmem:[%s651_s13] sm:$0x33 pattern:$0x76325410] %v2010_v11  ;;  %2003 = vmatprep.subr.msk.bf16.mxu1 %vm767_vm1, %v1230_v10  ;;  %v1315_v18 = vadd.f32 %v1314_v12, %v1270_v55  ;;  %v1363_v19 = vadd.f32 %v1356_v58, %v1313_v17  ;;  %v1464_v31 = vpop.f32.mrf.mxu0 }
 0x288   : > { %1493 = vmatpush1.bf16.msra.mxu1 %v1473_v13  ;;  %v1316_v15 = vpop.f32.mrf.mxu1 }
 0x289   : > { %v1364_v20 = vadd.f32 %v1358_v59, %v1315_v18  ;;  %v1465_v32 = vpop.f32.mrf.mxu0 }
 0x28a   : > { %v1317_v16 = vpop.f32.mrf.mxu1 }
 0x28b   : > { %2004 = vmatmul.mubr.msk.bf16.vlgmr.msra.gmra.mxu1 %vm763_vm3, %v679_v14 }
 0x28c   : > { %v1408_v21 = vpop.f32.mrf.mxu1 }
 0x28d   : > { %v1415_v22 = vadd.f32 %v1408_v21, %v1363_v19 }
 0x28e   : > { %v1410_v23 = vpop.f32.mrf.mxu1 }
 0x28f   : > { %v1416_v25 = vadd.f32 %v1410_v23, %v1364_v20  ;;  %v1467_v26 = vadd.f32 %v1460_v24, %v1415_v22 }
 0x290   : > { %v1412_v28 = vpop.f32.mrf.mxu1 }
 0x291   : > { %v1468_v29 = vadd.f32 %v1462_v27, %v1416_v25 }
 0x292   : > { %v1413_v30 = vpop.f32.mrf.mxu1 }
 0x34b   : > { %v1512_v33 = vpop.f32.mrf.mxu1 }
 0x34c   : > { %v1519_v34 = vadd.f32 %v1512_v33, %v1467_v26 }
 0x34d   : > { %v1514_v36 = vpop.f32.mrf.mxu1 }
 0x34e   : > { %v1526_v37 = vadd.f32 %v1524_v35, %v1519_v34  ;;  %v1520_v38 = vadd.f32 %v1514_v36, %v1468_v29 }
 0x34f   : > { %v1516_v39 = vpop.f32.mrf.mxu1 }
 0x350   : > { %v1527_v40 = vadd.f32 %v1524_v35, %v1520_v38  ;;  %v1528_v42 = vmax.f32 %v1526_v37, 0.0 }
 0x351   : > { %v1517_v41 = vpop.f32.mrf.mxu1 }
 0x352   : > { %v1529_v43 = vmax.f32 %v1527_v40, 0.0 }
 0x354   : > { %v2012_v44 = vpack.c.bf16 %v1529_v43, %v1528_v42 }
 0x356   : > { %2013 = vst.sshfl [vmem:[%s661_s22] sm:$0x33 pattern:$0x76325410] %v2012_v44 }
 0x357 PF: > { %s22_s19 = sadd.s32 1, %s2079_s19   ;;  %s2381_s17 = smov %s2075_s18 }
 0x358   : > { %p19_p5 = scmp.ge.s32.totalorder %s22_s19, 4   ;;  %s2382_s18 = smov %s2384_s20 }
 0x35a   :  { %21 = sbr.rel (!%p19_p5) target bundleno = 2 (0x2), region = 138 }

</bundles_post_ra>
